<compile_context>
chip_gen: v7x
topology: tpu7x:2x2x1
jax: 0.10.0
libtpu: 0.0.40
codegen_flags: <defaults>
</compile_context>

<pallas_src>
import functools

import jax
import jax.numpy as jnp
from jax.experimental import pallas as pl
from jax.experimental.pallas import tpu as pltpu

_SQRT_HALF = 0.7071067811865476


# --------------------------------------------------------------------------
# Kernels
# --------------------------------------------------------------------------
def _gelu_f32(h, approximate):
    if approximate:
        # tanh-approx GELU: transcendental runs on the EUP slot (VALU stays free).
        return jax.nn.gelu(h, approximate=True)
    # Exact erf GELU (bit-matches torch.nn.GELU default, but is VALU-heavy).
    return 0.5 * h * (1.0 + jax.lax.erf(h * jnp.float32(_SQRT_HALF)))


def _mlp_kernel_resident(approx_gelu, x_ref, w1_ref, b1_ref, w2_ref, b2_ref, o_ref):
    """Weight-resident path: grid = (row_tiles,), full hidden per step."""
    h = jnp.dot(x_ref[...], w1_ref[...], preferred_element_type=jnp.float32)
    h = _gelu_f32(h + b1_ref[...], approx_gelu)
    out = jnp.dot(h.astype(w2_ref.dtype), w2_ref[...],
                  preferred_element_type=jnp.float32)
    o_ref[...] = (out + b2_ref[...]).astype(o_ref.dtype)


def _mlp_kernel_chunked(approx_gelu, x_ref, w1_ref, b1_ref, w2_ref, b2_ref,
                        o_ref, *scratch):
    """Hidden-chunked path: grid = (row_tiles, hidden_chunks).

    Accumulates fc2 partial products over the hidden chunks.  If the output
    dtype is f32 there is no scratch and we accumulate directly into o_ref
    (its block index ignores j, so it is VMEM-resident across the j axis).
    """
    acc_ref = scratch[0] if scratch else o_ref
    j = pl.program_id(1)

    @pl.when(j == 0)
    def _():
        acc_ref[...] = jnp.zeros_like(acc_ref)

    h = jnp.dot(x_ref[...], w1_ref[...], preferred_element_type=jnp.float32)
    h = _gelu_f32(h + b1_ref[...], approx_gelu)
    acc_ref[...] += jnp.dot(h.astype(w2_ref.dtype), w2_ref[...],
                            preferred_element_type=jnp.float32)

    @pl.when(j == pl.num_programs(1) - 1)
    def _():
        o_ref[...] = (acc_ref[...] + b2_ref[...]).astype(o_ref.dtype)


# --------------------------------------------------------------------------
# Tiling / VMEM heuristics
# --------------------------------------------------------------------------
def _round_up(x, m):
    return -(-x // m) * m


def _vmem_budget_bytes():
    """Generation-aware VMEM budget: ~3/4 of capacity, capped at 100 MiB.

    v5e/v6e (128 MiB)  -> ~96-100 MiB; v7x (64 MiB per TC) -> ~48 MiB.
    """
    try:
        cap = int(pltpu.get_tpu_info().vmem_capacity_bytes)
    except Exception:
        cap = 64 << 20  # conservative (v7x per-TensorCore)
    return int(min(cap * 3 // 4, 100 << 20))


def _choose_tm(M, tm_cap):
    """Row tile <= tm_cap, multiple of 16, >= 2 tiles for non-tiny M.

    Deriving tm from cdiv(M, n_tiles) bounds padding waste in the ragged last
    tile, and >= 2 tiles keeps both v7x TensorCores busy on the parallel axis.
    """
    if M <= 256:
        return min(_round_up(M, 16), _round_up(tm_cap, 16))
    n = max(2, -(-M // tm_cap))
    return _round_up(-(-M // n), 16)


def _footprint_bytes(tm, th, dim, x_b, w_b, o_b, needs_acc):
    buf = 2 * tm * dim * (x_b + o_b)          # double-buffered x / out tiles
    buf += 2 * 2 * dim * th * w_b             # w1 + w2 blocks (2 buffers each)
    buf += 2 * (th + dim) * 4                 # bias blocks (f32)
    if needs_acc:
        buf += tm * dim * 4                   # f32 accumulator scratch
    buf += 2 * tm * th * 4                    # live fc1/GELU slab + cast copy
    return buf


def _choose_config(M, dim, hidden, x_b, w_b, o_b, out_is_f32, budget, tm_pref):
    # 1) Weight residency (th == hidden) is the biggest lever for M >> tm:
    #    weights are streamed from HBM exactly once.  Prefer the largest row
    #    tile that fits, but don't shrink below 256 rows just for residency.
    for tm_cap in [c for c in (tm_pref, 768, 512, 384, 256) if c <= tm_pref]:
        tm = _choose_tm(M, tm_cap)
        if _footprint_bytes(tm, hidden, dim, x_b, w_b, o_b, False) <= budget:
            return tm, hidden
    # 2) Streamed weights with hidden chunking.  tm sets flops per streamed
    #    weight byte, so it takes priority over th.
    th_opts = [t for t in (1024, 512, 256, 128) if t < hidden and hidden % t == 0]
    if not th_opts:
        th_opts = [hidden]  # no clean 128-multiple divisor: keep full extent
    for tm_cap in [c for c in (tm_pref, 768, 512, 384, 256, 128, 64, 32, 16)
                   if c <= tm_pref]:
        tm = _choose_tm(M, tm_cap)
        for th in th_opts:
            needs_acc = (th < hidden) and (not out_is_f32)
            if _footprint_bytes(tm, th, dim, x_b, w_b, o_b, needs_acc) <= budget:
                return tm, th
    # 3) Last resort for absurd dims: smallest row tile, smallest chunk.
    return _choose_tm(M, 16), th_opts[-1]


# --------------------------------------------------------------------------
# Wrapper
# --------------------------------------------------------------------------
@functools.partial(
    jax.jit,
    static_argnames=("tm", "matmul_dtype", "approximate_gelu", "hidden_chunk"))
def custom_mlp_forward(x, w1, b1, w2, b2, *, tm=1024,
                       matmul_dtype=jnp.bfloat16, approximate_gelu=True,
                       hidden_chunk=None):
    """Fused fc2(GELU(fc1(x))); dropout is identity at inference.

    x: [B, N, dim]; w1: [dim, hidden]; b1: [hidden]; w2: [hidden, dim]; b2: [dim].
    matmul_dtype: dtype for the MXU (default bf16; None keeps the input dtype).
    approximate_gelu: tanh GELU (fast, EUP) vs exact erf GELU.
    hidden_chunk: force a hidden-dim chunk size (must divide hidden); mainly
      a test hook -- normally the chunker picks it from the VMEM budget.
    """
    B, N, dim = x.shape
    hidden = w1.shape[1]
    M = B * N
    out_dtype = x.dtype
    out_is_f32 = jnp.dtype(out_dtype) == jnp.dtype(jnp.float32)

    x2d = x.reshape(M, dim)
    if matmul_dtype is not None:
        x2d = x2d.astype(matmul_dtype)
        w1 = w1.astype(matmul_dtype)
        w2 = w2.astype(matmul_dtype)
    b1_2d = b1.reshape(1, hidden).astype(jnp.float32)
    b2_2d = b2.reshape(1, dim).astype(jnp.float32)

    x_b = x2d.dtype.itemsize
    w_b = w1.dtype.itemsize
    o_b = jnp.dtype(out_dtype).itemsize

    budget = _vmem_budget_bytes()
    if hidden_chunk is not None:
        assert hidden % hidden_chunk == 0, "hidden_chunk must divide hidden"
        th = hidden_chunk
        tm_eff = _choose_tm(M, tm)
    else:
        tm_eff, th = _choose_config(M, dim, hidden, x_b, w_b, o_b, out_is_f32,
                                    budget, tm)

    n_i = pl.cdiv(M, tm_eff)
    resident = (th == hidden)

    if resident:
        grid = (n_i,)
        in_specs = [
            pl.BlockSpec((tm_eff, dim), lambda i: (i, 0)),       # x rows
            pl.BlockSpec((dim, hidden), lambda i: (0, 0)),       # w1 (resident)
            pl.BlockSpec((1, hidden), lambda i: (0, 0)),         # b1
            pl.BlockSpec((hidden, dim), lambda i: (0, 0)),       # w2 (resident)
            pl.BlockSpec((1, dim), lambda i: (0, 0)),            # b2
        ]
        out_specs = pl.BlockSpec((tm_eff, dim), lambda i: (i, 0))
        scratch_shapes = []
        kernel = functools.partial(_mlp_kernel_resident, approximate_gelu)
        dim_sem = ("parallel",)
        weight_passes = 1
    else:
        grid = (n_i, hidden // th)
        in_specs = [
            pl.BlockSpec((tm_eff, dim), lambda i, j: (i, 0)),    # x rows
            pl.BlockSpec((dim, th), lambda i, j: (0, j)),        # w1 chunk
            pl.BlockSpec((1, th), lambda i, j: (0, j)),          # b1 chunk
            pl.BlockSpec((th, dim), lambda i, j: (j, 0)),        # w2 chunk
            pl.BlockSpec((1, dim), lambda i, j: (0, 0)),         # b2
        ]
        out_specs = pl.BlockSpec((tm_eff, dim), lambda i, j: (i, 0))
        # f32 outputs accumulate directly in o_ref (resident across j).
        scratch_shapes = ([] if out_is_f32
                          else [pltpu.VMEM((tm_eff, dim), jnp.float32)])
        kernel = functools.partial(_mlp_kernel_chunked, approximate_gelu)
        dim_sem = ("parallel", "arbitrary")
        weight_passes = n_i  # weights re-streamed once per row tile

    cost = pl.CostEstimate(
        flops=4 * M * dim * hidden,                       # two matmuls
        transcendentals=M * hidden,                       # GELU
        bytes_accessed=(M * dim * (x_b + o_b)
                        + weight_passes * 2 * dim * hidden * w_b
                        + (dim + hidden) * 4),
    )

    out2d = pl.pallas_call(
        kernel,
        out_shape=jax.ShapeDtypeStruct((M, dim), out_dtype),
        grid_spec=pltpu.PrefetchScalarGridSpec(
            num_scalar_prefetch=0,
            grid=grid,
            in_specs=in_specs,
            out_specs=out_specs,
            scratch_shapes=scratch_shapes,
        ),
        compiler_params=pltpu.CompilerParams(
            dimension_semantics=dim_sem,
            vmem_limit_bytes=int(budget),
        ),
        cost_estimate=cost,
    )(x2d, w1, b1_2d, w2, b2_2d)

    return out2d.reshape(B, N, dim)


def init_params(key, dim, hidden_dim):
    """nn.Linear-style init (uniform +/- 1/sqrt(fan_in)), weights as [in, out]."""
    k1, k2, k3, k4 = jax.random.split(key, 4)
    bound1 = 1.0 / jnp.sqrt(dim)
    bound2 = 1.0 / jnp.sqrt(hidden_dim)
    w1 = jax.random.uniform(k1, (dim, hidden_dim), jnp.float32, -bound1, bound1)
    b1 = jax.random.uniform(k2, (hidden_dim,), jnp.float32, -bound1, bound1)
    w2 = jax.random.uniform(k3, (hidden_dim, dim), jnp.float32, -bound2, bound2)
    b2 = jax.random.uniform(k4, (dim,), jnp.float32, -bound2, bound2)
    return w1, b1, w2, b2


if __name__ == "__main__":
    # Small demo shapes: batch=2, seq=8, dim=32, hidden=64.
    B, N, dim, hidden = 2, 8, 32, 64

    key = jax.random.PRNGKey(0)
    kx, kp = jax.random.split(key)
    x = jax.random.normal(kx, (B, N, dim), dtype=jnp.float32)
    w1, b1, w2, b2 = init_params(kp, dim, hidden)

    def ref_mlp(xx, a1, c1, a2, c2):
        h = jax.nn.gelu(xx @ a1 + c1, approximate=True)
        return h @ a2 + c2

    ref = ref_mlp(x, w1, b1, w2, b2)

    # Default path: bf16 MXU, tanh GELU, weight-resident tiling.
    out_bf16 = jax.block_until_ready(custom_mlp_forward(x, w1, b1, w2, b2))
    assert out_bf16.shape == (B, N, dim)
    assert jnp.allclose(out_bf16, ref, atol=3e-2, rtol=3e-2)

    # f32 MXU path tracks the f32 reference tightly.
    out_f32 = jax.block_until_ready(
        custom_mlp_forward(x, w1, b1, w2, b2, matmul_dtype=None))
    assert jnp.allclose(out_f32, ref, atol=1e-5, rtol=1e-5)

    # Exercise the hidden-chunked reduction path (forced chunking), f32 output
    # accumulates directly into o_ref.
    hidden2 = 256
    w1b, b1b, w2b, b2b = init_params(kp, dim, hidden2)
    ref2 = ref_mlp(x, w1b, b1b, w2b, b2b)
    out_chunked = jax.block_until_ready(
        custom_mlp_forward(x, w1b, b1b, w2b, b2b,
                           matmul_dtype=None, hidden_chunk=128))
    assert jnp.allclose(out_chunked, ref2, atol=1e-5, rtol=1e-5)

    # Chunked path with a bf16 output exercises the f32 accumulator scratch.
    out_chunked_bf16 = jax.block_until_ready(
        custom_mlp_forward(x.astype(jnp.bfloat16), w1b, b1b, w2b, b2b,
                           hidden_chunk=128))
    assert out_chunked_bf16.dtype == jnp.bfloat16
    assert jnp.allclose(out_chunked_bf16.astype(jnp.float32), ref2,
                        atol=1e-1, rtol=1e-1)

    print("KERNEL_OK")
</pallas_src>

<mosaic_0001>
module attributes {stable_mosaic.version = 11 : i64} {
  func.func @_mlp_kernel_resident(%arg0: i32, %arg1: memref<16x32xbf16, #tpu.memory_space<vmem>>, %arg2: memref<32x64xbf16, #tpu.memory_space<vmem>>, %arg3: memref<1x64xf32, #tpu.memory_space<vmem>>, %arg4: memref<64x32xbf16, #tpu.memory_space<vmem>>, %arg5: memref<1x32xf32, #tpu.memory_space<vmem>>, %arg6: memref<16x32xf32, #tpu.memory_space<vmem>>) attributes {dimension_semantics = [#tpu.dimension_semantics<parallel>], iteration_bounds = array<i64: 1>, scalar_prefetch = 0 : i64, scratch_operands = 0 : i64, tpu.core_type = #tpu.core_type<tc>, window_params = [{transform_indices = @transform_0, window_bounds = array<i64: 16, 32>}, {pipeline_mode = #tpu.pipeline_mode<synchronous>, transform_indices = @transform_1, window_bounds = array<i64: 32, 64>}, {pipeline_mode = #tpu.pipeline_mode<synchronous>, transform_indices = @transform_2, window_bounds = array<i64: 1, 64>}, {pipeline_mode = #tpu.pipeline_mode<synchronous>, transform_indices = @transform_3, window_bounds = array<i64: 64, 32>}, {pipeline_mode = #tpu.pipeline_mode<synchronous>, transform_indices = @transform_4, window_bounds = array<i64: 1, 32>}, {transform_indices = @transform_5, window_bounds = array<i64: 16, 32>}]} {
    %c0 = arith.constant 0 : index
    %c0_0 = arith.constant 0 : index
    %0 = vector.load %arg1[%c0, %c0_0] : memref<16x32xbf16, #tpu.memory_space<vmem>>, vector<16x32xbf16>
    %c0_1 = arith.constant 0 : index
    %c0_2 = arith.constant 0 : index
    %1 = vector.load %arg2[%c0_1, %c0_2] : memref<32x64xbf16, #tpu.memory_space<vmem>>, vector<32x64xbf16>
    %cst = arith.constant dense<0.000000e+00> : vector<16x64xf32>
    %2 = tpu.matmul %0, %1, %cst {dimension_numbers = #tpu.dot_dimension_numbers<[1], [0], [0], [1], [0, 0, 1, 1], [], []>} : vector<16x32xbf16>, vector<32x64xbf16>, vector<16x64xf32> -> vector<16x64xf32>
    %c0_3 = arith.constant 0 : index
    %c0_4 = arith.constant 0 : index
    %3 = vector.load %arg3[%c0_3, %c0_4] : memref<1x64xf32, #tpu.memory_space<vmem>>, vector<1x64xf32>
    %4 = vector.broadcast %3 : vector<1x64xf32> to vector<16x64xf32>
    %5 = arith.addf %2, %4 : vector<16x64xf32>
    %6 = arith.mulf %5, %5 : vector<16x64xf32>
    %7 = arith.mulf %5, %6 : vector<16x64xf32>
    %cst_5 = arith.constant 4.471500e-02 : f32
    %8 = vector.broadcast %cst_5 : f32 to vector<16x64xf32>
    %9 = arith.mulf %8, %7 : vector<16x64xf32>
    %10 = arith.addf %5, %9 : vector<16x64xf32>
    %cst_6 = arith.constant 0.797884583 : f32
    %11 = vector.broadcast %cst_6 : f32 to vector<16x64xf32>
    %12 = arith.mulf %11, %10 : vector<16x64xf32>
    %13 = math.tanh %12 : vector<16x64xf32>
    %cst_7 = arith.constant 1.000000e+00 : f32
    %14 = vector.broadcast %cst_7 : f32 to vector<16x64xf32>
    %15 = arith.addf %14, %13 : vector<16x64xf32>
    %cst_8 = arith.constant 5.000000e-01 : f32
    %16 = vector.broadcast %cst_8 : f32 to vector<16x64xf32>
    %17 = arith.mulf %16, %15 : vector<16x64xf32>
    %18 = arith.mulf %5, %17 : vector<16x64xf32>
    %19 = arith.truncf %18 : vector<16x64xf32> to vector<16x64xbf16>
    %c0_9 = arith.constant 0 : index
    %c0_10 = arith.constant 0 : index
    %20 = vector.load %arg4[%c0_9, %c0_10] : memref<64x32xbf16, #tpu.memory_space<vmem>>, vector<64x32xbf16>
    %cst_11 = arith.constant dense<0.000000e+00> : vector<16x32xf32>
    %21 = tpu.matmul %19, %20, %cst_11 {dimension_numbers = #tpu.dot_dimension_numbers<[1], [0], [0], [1], [0, 0, 1, 1], [], []>} : vector<16x64xbf16>, vector<64x32xbf16>, vector<16x32xf32> -> vector<16x32xf32>
    %c0_12 = arith.constant 0 : index
    %c0_13 = arith.constant 0 : index
    %22 = vector.load %arg5[%c0_12, %c0_13] : memref<1x32xf32, #tpu.memory_space<vmem>>, vector<1x32xf32>
    %23 = vector.broadcast %22 : vector<1x32xf32> to vector<16x32xf32>
    %24 = arith.addf %21, %23 : vector<16x32xf32>
    %c0_14 = arith.constant 0 : index
    %c0_15 = arith.constant 0 : index
    %25 = vector.load %arg6[%c0_14, %c0_15] : memref<16x32xf32, #tpu.memory_space<vmem>>, vector<16x32xf32>
    tpu.vector_store %arg6[%c0_14, %c0_15], %24 {strides = array<i32>} : memref<16x32xf32, #tpu.memory_space<vmem>>, vector<16x32xf32>,
    return
  }
  func.func @transform_0(%arg0: i32) -> (i32, i32) {
    %c0_i32 = arith.constant 0 : i32
    %c0_i32_0 = arith.constant 0 : i32
    return %arg0, %c0_i32 : i32, i32
  }
  func.func @transform_1(%arg0: i32) -> (i32, i32) {
    %c0_i32 = arith.constant 0 : i32
    %c0_i32_0 = arith.constant 0 : i32
    %c0_i32_1 = arith.constant 0 : i32
    return %c0_i32, %c0_i32_0 : i32, i32
  }
  func.func @transform_2(%arg0: i32) -> (i32, i32) {
    %c0_i32 = arith.constant 0 : i32
    %c0_i32_0 = arith.constant 0 : i32
    %c0_i32_1 = arith.constant 0 : i32
    return %c0_i32, %c0_i32_0 : i32, i32
  }
  func.func @transform_3(%arg0: i32) -> (i32, i32) {
    %c0_i32 = arith.constant 0 : i32
    %c0_i32_0 = arith.constant 0 : i32
    %c0_i32_1 = arith.constant 0 : i32
    return %c0_i32, %c0_i32_0 : i32, i32
  }
  func.func @transform_4(%arg0: i32) -> (i32, i32) {
    %c0_i32 = arith.constant 0 : i32
    %c0_i32_0 = arith.constant 0 : i32
    %c0_i32_1 = arith.constant 0 : i32
    return %c0_i32, %c0_i32_0 : i32, i32
  }
  func.func @transform_5(%arg0: i32) -> (i32, i32) {
    %c0_i32 = arith.constant 0 : i32
    %c0_i32_0 = arith.constant 0 : i32
    return %arg0, %c0_i32 : i32, i32
  }
}

</mosaic_0001>

<bundles_post_ra>
// kernel: custom_mlp_forward.1
= control target key start
LH: loop header
LB: loop body
LE: loop exit
PB: predicated region body
PF: predicated region fallthrough
CT: control target
= control target key end

     0   :  { %v297_v1 = vmov 0.0   ;;  %vm298_vm0 = vmmov 0   ;;  %vm52_vm1 = vcmask 261120   ;;  %s374_s0 = inlined_call_operand.vmem [shape: bf16[16,32], index: 0, kind: input, shape index: {}]   ;;  %s375_s1 = inlined_call_operand.vmem [shape: bf16[32,64], index: 1, kind: input, shape index: {}]   ;;  %s376_s2 = inlined_call_operand.vmem [shape: f32[1,64], index: 2, kind: input, shape index: {}]   ;;  %s377_s3 = inlined_call_operand.vmem [shape: bf16[64,32], index: 3, kind: input, shape index: {}]   ;;  %s378_s4 = inlined_call_operand.vmem [shape: f32[1,32], index: 4, kind: input, shape index: {}]   ;;  %s379_s5 = inlined_call_operand.hbm [shape: f32[16,32], index: 5, kind: output, shape index: {}]  }
   0x1   :  { %v262_v0 = vld [vmem:[%s375_s1] sm:$0xff]   ;;  %237 = vmatprep.subr.bf16.mxu0 %v297_v1  ;;  %245 = vmatprep.subr.bf16.mxu1 %v297_v1  ;;  %v263_v2 = vld [vmem:[%s375_s1 + $0x8] sm:$0xff]  }
   0x2   :  { %238 = vmatpush3.bf16.msra.mxu0 %v262_v0  ;;  %241 = vmatprep.mubr.msk.bf16.mxu0 %vm298_vm0, %v297_v1  ;;  %v264_v3 = vld [vmem:[%s374_s0] sm:$0xff]  }
   0x3   :  { %239 = vmatprep.subr.bf16.mxu0 %v297_v1  ;;  %253 = vmatprep.mubr.msk.bf16.mxu1 %vm298_vm0, %v297_v1 }
   0x6   :  { %240 = vmatpush3.bf16.msra.mxu0 %v263_v2 }
   0x7   :  { %10 = vsyncpa [#allocation3], 0  ;;  %v265_v4 = vld [vmem:[%s377_s3] sm:$0xff]   ;;  %v266_v5 = vld [vmem:[%s377_s3 + $0x8] sm:$0xff]   ;;  %vm155_vm2 = vcmask 523264   ;;  %s299_s7 = smov [#allocation2]  }
   0x8   :  { %246 = vmatpush3.bf16.msra.mxu1 %v265_v4  ;;  %v267_v6 = vld [vmem:[%s377_s3 + $0x10] sm:$0xff]   ;;  %v268_v7 = vld [vmem:[%s377_s3 + $0x18] sm:$0xff]   ;;  %v218_v8 = vld [vmem:[%s376_s2] ss:$0 sm:$0xff]  ;;  %s207_s8 = sshll.u32 %s299_s7, 4  ;;  %s208_s8 = int_to_ptr.vmem [resolvable:$true] %s207_s8 }
   0x9   :  { %242 = vmatmul.mubr.msk.bf16.vlgmr.msra.gmra.mrb[0].mxu0 %vm52_vm1, %v264_v3  ;;  %247 = vmatprep.subr.bf16.mxu1 %v297_v1  ;;  %v223_v34 = vld [vmem:[%s378_s4] ss:$0 sm:$0xff]  ;;  %s273_s9 = scalar_lea.vmem %s208_s8, 256  ;;  %p278_p1 = scmp.lt.s32.totalorder %s208_s8, %s208_s8 }
   0xa   :  { %p274_p0 = scmp.ne.s32.totalorder %s208_s8, %s273_s9  ;;  %p279_p2 = scmp.lt.s32.totalorder %s273_s9, %s273_s9 }
   0xc   :  { %248 = vmatpush3.bf16.msra.mxu1 %v266_v5  ;;  %p280_p3 = por %p279_p2, %p278_p1 }
   0xd   :  { %249 = vmatprep.subr.bf16.mxu1 %v297_v1 }
   0xe   :  { %p281_p4 = pnand %p280_p3, %p274_p0 }
  0x10   :  { %250 = vmatpush3.bf16.msra.mxu1 %v267_v6 }
  0x11   :  { %251 = vmatprep.subr.bf16.mxu1 %v297_v1 }
  0x14   :  { %252 = vmatpush3.bf16.msra.mxu1 %v268_v7 }
  0xdc   :  { %v90_v9 = vpop.f32.mrb[0].mxu0 }
  0xdd   :  { %v91_v10 = vadd.f32 %v218_v8, %v90_v9  ;;  %v243_v11 = vpop.f32.mrb[1].mxu0 }
  0xde   :  { %v93_v12 = vpop.f32.mrb[2].mxu0 }
  0xdf   :  { %v97_v13 = vmul.f32 %v91_v10, %v91_v10  ;;  %v94_v14 = vadd.f32 %v218_v8, %v93_v12  ;;  %v244_v15 = vpop.f32.mrb[3].mxu0 }
  0xe1   :  { %v99_v16 = vmul.f32 %v97_v13, %v91_v10  ;;  %v98_v17 = vmul.f32 %v94_v14, %v94_v14 }
  0xe3   :  { %v101_v18 = vmul.f32 0.044715, %v99_v16  ;;  %v100_v19 = vmul.f32 %v98_v17, %v94_v14 }
  0xe5   :  { %v103_v20 = vadd.f32 %v101_v18, %v91_v10  ;;  %v102_v21 = vmul.f32 0.044715, %v100_v19 }
  0xe7   :  { %v105_v22 = vmul.f32 0.7978846, %v103_v20  ;;  %v104_v23 = vadd.f32 %v102_v21, %v94_v14 }
  0xe9   :  { %269 = vtanh.f32 %v105_v22  ;;  %v106_v24 = vmul.f32 0.7978846, %v104_v23 }
  0xeb   :  { %271 = vtanh.f32 %v106_v24 }
  0xf3   :  { %v270_v25 = vpop.eup %269 }
  0xf4   :  { %v109_v26 = vadd.f32 1.0, %v270_v25 }
  0xf5   :  { %v272_v27 = vpop.eup %271 }
  0xf6   :  { %v111_v28 = vmul.f32 0.5, %v109_v26  ;;  %v110_v29 = vadd.f32 1.0, %v272_v27 }
  0xf8   :  { %v112_v30 = vmul.f32 0.5, %v110_v29  ;;  %v113_v31 = vmul.f32 %v111_v28, %v91_v10 }
  0xfa   :  { %v114_v32 = vmul.f32 %v112_v30, %v94_v14 }
  0xfc   :  { %v115_v33 = vpack.c.bf16 %v114_v32, %v113_v31 }
  0xfe   :  { %254 = vmatmul.mubr.msk.bf16.vlgmr.msra.gmra.mrb[0].mxu1 %vm155_vm2, %v115_v33 }
 0x1d1   :  { %v193_v35 = vpop.f32.mrb[0].mxu1 }
 0x1d2   :  { %v194_v36 = vadd.f32 %v223_v34, %v193_v35  ;;  %v255_v37 = vpop.f32.mrb[1].mxu1 }
 0x1d3   :  { %v196_v38 = vpop.f32.mrb[2].mxu1 }
 0x1d4   :  { %200 = vst.msk [vmem:[#allocation2] sm:$0xff] %vm52_vm1, %v194_v36  ;;  %v197_v39 = vadd.f32 %v223_v34, %v196_v38  ;;  %v256_v40 = vpop.f32.mrb[3].mxu1 }
 0x1d6   :  { %201 = vst.msk [vmem:[#allocation2 + $0x8] sm:$0xff] %vm52_vm1, %v197_v39 }
 0x1d7   :  { %284 = shalt.err (!%p281_p4)
}
 0x1d8   :  { %s285_s11 = scalar_lea.hbm %s379_s5, 256 }
 0x1d9   :  { %p286_p5 = scmp.ne.s32.totalorder %s379_s5, %s285_s11  ;;  %p289_p6 = scmp.lt.u32.totalorder %s285_s11, %s379_s5 }
 0x1db   :  { %p291_p7 = pnand %p289_p6, %p286_p5 }
 0x1dd   :  { %294 = shalt.err (!%p291_p7)
}
 0x1de   :  { %s300_s16 = smov 128   ;;  %s301_s17 = smov 8  }
 0x1df   :  { %213 = dma.vmem_to_hbm [thread:$0]  %s208_s8, 256, %s379_s5, [#allocation3], %s300_s16, %s300_s16, %s301_s17  }
 0x1e0   :  { %295 = dma.done.wait [#allocation3], 256  }
 0x1e1   :  { %296 = vsyncadd [#allocation3], 4294967040 }
 0x1e2   :  { %217 = vsyncpa [#allocation3], 1 }

</bundles_post_ra>
